<compile_context>
chip_gen: v7x
topology: tpu7x:2x2x1
jax: 0.10.0
libtpu: 0.0.40
codegen_flags: <defaults>
</compile_context>

<pallas_src>
import functools

import jax
import jax.numpy as jnp
import numpy as np
from jax.experimental import pallas as pl
from jax.experimental.pallas import tpu as pltpu


def _per_item_mean_loss(x, t, *, loss_weight, loss_alpha):
    """x: (Bt, N, C) f32 logits, t: (Bt, N, 1) i32 labels -> (Bt, 1, 1) loss."""
    bt, n, c = x.shape

    # One-hot as a boolean mask: class iota along lanes vs. labels broadcast.
    class_ids = jax.lax.broadcasted_iota(jnp.int32, (bt, n, c), 2)
    is_pos = class_ids == t                                    # (Bt, N, C)

    neg_big = jnp.float32(-3e4)                                # masked-out sentinel
    y_neg = jnp.where(is_pos, neg_big, x)                      # positives masked
    y_pos = jnp.where(is_pos, -x, neg_big)                     # negatives masked

    def lse_over_samples_with_zero(v):
        # logsumexp over the sample (sublane) axis with an extra 0 appended,
        # i.e. log(sum_i exp(v_i) + 1), folded analytically.  -> (Bt, 1, C)
        m = jnp.maximum(jnp.max(v, axis=1, keepdims=True), 0.0)
        s = jnp.sum(jnp.exp(v - m), axis=1, keepdims=True) + jnp.exp(-m)
        return jnp.log(s) + m

    loss = (lse_over_samples_with_zero(y_neg)
            + lse_over_samples_with_zero(y_pos))               # (Bt, 1, C) lane-dense

    # Drop class 0 (the [1:] slice in the reference) with a lane mask.
    valid = jax.lax.broadcasted_iota(jnp.int32, (1, 1, c), 2) >= 1

    loss_max = jnp.max(jnp.where(valid, loss, -jnp.inf),
                       axis=2, keepdims=True)                  # (Bt, 1, 1)
    inv_max = pl.reciprocal(loss_max, approx=True)             # EUP, nearly free
    inv_max = inv_max * (2.0 - loss_max * inv_max)             # 1 Newton step -> ~f32 exact
    inst_w = loss * inv_max
    if loss_alpha != 1.0:
        inst_w = jnp.exp(jnp.float32(loss_alpha) * jnp.log(inst_w))  # x ** alpha via EUP
    weighted = loss * inst_w * jnp.float32(loss_weight)

    return (jnp.sum(jnp.where(valid, weighted, 0.0), axis=2, keepdims=True)
            / jnp.float32(c - 1))                              # (Bt, 1, 1)


def _multilabel_loss_kernel(x_ref, t_ref, o_ref, *, loss_weight, loss_alpha):
    # x_ref: (Bt, N, C) logits (any float dtype; upcast here so bf16 DMAs stay bf16)
    # t_ref: (Bt, N, 1) int32 labels
    # o_ref: (Bt, 8, 128) f32; per-item loss broadcast over the tile (unmasked store)
    x = x_ref[...].astype(jnp.float32)
    mean = _per_item_mean_loss(x, t_ref[...],
                               loss_weight=loss_weight, loss_alpha=loss_alpha)
    o_ref[...] = jnp.broadcast_to(mean, o_ref.shape)


def multilabel_loss(inputs, targets, weights=None, avg_factor=None,
                    *, loss_weight=1.0, loss_alpha=1.0):
    """Single-instance forward. inputs: (N, C) float logits, targets: (N,) ints.

    `weights` and `avg_factor` are accepted for API parity with the PyTorch
    module but (as in the reference forward) are unused.
    """
    del weights, avg_factor
    n, c = inputs.shape
    x = inputs.reshape(1, n, c)                        # leading-dim reshape: free
    t = targets.astype(jnp.int32).reshape(1, n, 1)

    kernel = functools.partial(_multilabel_loss_kernel,
                               loss_weight=float(loss_weight),
                               loss_alpha=float(loss_alpha))
    out = pl.pallas_call(
        kernel,
        out_shape=jax.ShapeDtypeStruct((1, 8, 128), jnp.float32),
        in_specs=[pl.BlockSpec(memory_space=pltpu.MemorySpace.VMEM),
                  pl.BlockSpec(memory_space=pltpu.MemorySpace.VMEM)],
        out_specs=pl.BlockSpec(memory_space=pltpu.MemorySpace.VMEM),
    )(x, t)
    return out[0, 0, 0]


def multilabel_loss_batched(inputs, targets, *, loss_weight=1.0, loss_alpha=1.0,
                            b_tile=None):
    """Batched forward: B independent loss evaluations in one pallas_call.

    inputs: (B, N, C) float logits, targets: (B, N) ints.  Returns (B,) losses.
    Grid axis is marked "parallel" so it shards across TensorCores on v7x.
    """
    b, n, c = inputs.shape
    if b_tile is None:
        b_tile = next(d for d in (16, 8, 4, 2, 1) if b % d == 0)
    assert b % b_tile == 0, "b_tile must divide B"
    t = targets.astype(jnp.int32).reshape(b, n, 1)

    kernel = functools.partial(_multilabel_loss_kernel,
                               loss_weight=float(loss_weight),
                               loss_alpha=float(loss_alpha))
    out = pl.pallas_call(
        kernel,
        out_shape=jax.ShapeDtypeStruct((b, 8, 128), jnp.float32),
        grid=(b // b_tile,),
        in_specs=[pl.BlockSpec((b_tile, n, c), lambda i: (i, 0, 0)),
                  pl.BlockSpec((b_tile, n, 1), lambda i: (i, 0, 0))],
        out_specs=pl.BlockSpec((b_tile, 8, 128), lambda i: (i, 0, 0)),
        compiler_params=pltpu.CompilerParams(
            dimension_semantics=("parallel",)),
    )(inputs, t)
    return out[:, 0, 0]


def _reference_loss(inputs, targets, loss_weight=1.0, loss_alpha=1.0):
    # Pure-JAX transliteration of the PyTorch forward (for validation).
    c = inputs.shape[1]
    y_true = jax.nn.one_hot(targets.astype(jnp.int32), c, dtype=jnp.float32)
    y_pred = jnp.transpose(inputs.astype(jnp.float32))[1:]    # (C-1, N)
    y_true = jnp.transpose(y_true)[1:]                        # (C-1, N)
    y_pred = (1.0 - 2.0 * y_true) * y_pred
    y_neg = y_pred - y_true * 9999.0
    y_pos = y_pred - (1.0 - y_true) * 9999.0
    zeros = jnp.zeros_like(y_pred[..., :1])
    y_neg = jnp.concatenate([y_neg, zeros], axis=-1)
    y_pos = jnp.concatenate([y_pos, zeros], axis=-1)
    loss = jax.nn.logsumexp(y_neg, axis=-1) + jax.nn.logsumexp(y_pos, axis=-1)
    inst_w = (loss / jnp.max(loss)) ** loss_alpha
    return jnp.mean(loss * inst_w * loss_weight)


if __name__ == "__main__":
    # Shapes from the module docstring: inputs (100, 57), targets (100,).
    N, C = 100, 57
    key = jax.random.PRNGKey(0)
    k1, k2, k3, k4 = jax.random.split(key, 4)

    # --- single-instance path (matches the module forward signature) ---
    inputs = jax.random.normal(k1, (N, C), dtype=jnp.float32) * 2.0
    targets = jax.random.randint(k2, (N,), 0, C, dtype=jnp.int32)
    weights = jnp.ones((N,), jnp.float32)                     # unused by forward
    avg_factor = float(N)                                     # unused by forward

    out = multilabel_loss(inputs, targets, weights, avg_factor,
                          loss_weight=1.0, loss_alpha=1.0)
    out = jax.block_until_ready(out)
    ref = jax.block_until_ready(_reference_loss(inputs, targets, 1.0, 1.0))
    np.testing.assert_allclose(np.asarray(out), np.asarray(ref),
                               rtol=1e-4, atol=1e-4)

    # --- batched path: B loss evaluations in one gridded pallas_call ---
    B = 8
    binputs = jax.random.normal(k3, (B, N, C), dtype=jnp.float32) * 2.0
    btargets = jax.random.randint(k4, (B, N), 0, C, dtype=jnp.int32)
    bout = multilabel_loss_batched(binputs, btargets,
                                   loss_weight=0.5, loss_alpha=2.0, b_tile=4)
    bout = jax.block_until_ready(bout)
    bref = jax.block_until_ready(
        jax.vmap(lambda x, t: _reference_loss(x, t, 0.5, 2.0))(binputs, btargets))
    np.testing.assert_allclose(np.asarray(bout), np.asarray(bref),
                               rtol=2e-4, atol=2e-4)

    print("KERNEL_OK")
</pallas_src>

<mosaic_0001>
module attributes {stable_mosaic.version = 11 : i64} {
  func.func @_multilabel_loss_kernel(%arg0: memref<1x100x57xf32, #tpu.memory_space<vmem>>, %arg1: memref<1x100x1xi32, #tpu.memory_space<vmem>>, %arg2: memref<1x8x128xf32, #tpu.memory_space<vmem>>) attributes {dimension_semantics = [], scalar_prefetch = 0 : i64, scratch_operands = 0 : i64, tpu.core_type = #tpu.core_type<tc>} {
    %c0 = arith.constant 0 : index
    %c0_0 = arith.constant 0 : index
    %c0_1 = arith.constant 0 : index
    %0 = vector.load %arg0[%c0, %c0_0, %c0_1] : memref<1x100x57xf32, #tpu.memory_space<vmem>>, vector<1x100x57xf32>
    %c0_2 = arith.constant 0 : index
    %c0_3 = arith.constant 0 : index
    %c0_4 = arith.constant 0 : index
    %1 = vector.load %arg1[%c0_2, %c0_3, %c0_4] : memref<1x100x1xi32, #tpu.memory_space<vmem>>, vector<1x100x1xi32>
    %2 = tpu.iota {dimensions = array<i32: 2>} : vector<1x100x57xi32>
    %3 = vector.broadcast %1 : vector<1x100x1xi32> to vector<1x100x57xi32>
    %4 = arith.cmpi eq, %2, %3 : vector<1x100x57xi32>
    %cst = arith.constant -3.000000e+04 : f32
    %5 = vector.broadcast %cst : f32 to vector<1x100x57xf32>
    %6 = arith.select %4, %5, %0 : vector<1x100x57xi1>, vector<1x100x57xf32>
    %cst_5 = arith.constant 0.000000e+00 : f32
    %7 = vector.broadcast %cst_5 : f32 to vector<1x100x57xf32>
    %8 = arith.subf %7, %0 : vector<1x100x57xf32>
    %cst_6 = arith.constant -3.000000e+04 : f32
    %9 = vector.broadcast %cst_6 : f32 to vector<1x100x57xf32>
    %10 = arith.select %4, %8, %9 : vector<1x100x57xi1>, vector<1x100x57xf32>
    %cst_7 = arith.constant dense<0xFF800000> : vector<1x57xf32>
    %11 = vector.multi_reduction <maximumf>, %6, %cst_7 [1] : vector<1x100x57xf32> to vector<1x57xf32>
    %12 = vector.shape_cast %11 : vector<1x57xf32> to vector<1x1x57xf32>
    %cst_8 = arith.constant 0.000000e+00 : f32
    %13 = vector.broadcast %cst_8 : f32 to vector<1x1x57xf32>
    %14 = arith.maximumf %12, %13 : vector<1x1x57xf32>
    %15 = vector.broadcast %14 : vector<1x1x57xf32> to vector<1x100x57xf32>
    %16 = arith.subf %6, %15 : vector<1x100x57xf32>
    %17 = math.exp %16 : vector<1x100x57xf32>
    %cst_9 = arith.constant dense<0.000000e+00> : vector<1x57xf32>
    %18 = vector.multi_reduction <add>, %17, %cst_9 [1] : vector<1x100x57xf32> to vector<1x57xf32>
    %19 = vector.shape_cast %18 : vector<1x57xf32> to vector<1x1x57xf32>
    %cst_10 = arith.constant 0.000000e+00 : f32
    %20 = vector.broadcast %cst_10 : f32 to vector<1x1x57xf32>
    %21 = arith.subf %20, %14 : vector<1x1x57xf32>
    %22 = math.exp %21 : vector<1x1x57xf32>
    %23 = arith.addf %19, %22 : vector<1x1x57xf32>
    %24 = math.log %23 : vector<1x1x57xf32>
    %25 = arith.addf %24, %14 : vector<1x1x57xf32>
    %cst_11 = arith.constant dense<0xFF800000> : vector<1x57xf32>
    %26 = vector.multi_reduction <maximumf>, %10, %cst_11 [1] : vector<1x100x57xf32> to vector<1x57xf32>
    %27 = vector.shape_cast %26 : vector<1x57xf32> to vector<1x1x57xf32>
    %cst_12 = arith.constant 0.000000e+00 : f32
    %28 = vector.broadcast %cst_12 : f32 to vector<1x1x57xf32>
    %29 = arith.maximumf %27, %28 : vector<1x1x57xf32>
    %30 = vector.broadcast %29 : vector<1x1x57xf32> to vector<1x100x57xf32>
    %31 = arith.subf %10, %30 : vector<1x100x57xf32>
    %32 = math.exp %31 : vector<1x100x57xf32>
    %cst_13 = arith.constant dense<0.000000e+00> : vector<1x57xf32>
    %33 = vector.multi_reduction <add>, %32, %cst_13 [1] : vector<1x100x57xf32> to vector<1x57xf32>
    %34 = vector.shape_cast %33 : vector<1x57xf32> to vector<1x1x57xf32>
    %cst_14 = arith.constant 0.000000e+00 : f32
    %35 = vector.broadcast %cst_14 : f32 to vector<1x1x57xf32>
    %36 = arith.subf %35, %29 : vector<1x1x57xf32>
    %37 = math.exp %36 : vector<1x1x57xf32>
    %38 = arith.addf %34, %37 : vector<1x1x57xf32>
    %39 = math.log %38 : vector<1x1x57xf32>
    %40 = arith.addf %39, %29 : vector<1x1x57xf32>
    %41 = arith.addf %25, %40 : vector<1x1x57xf32>
    %42 = tpu.iota {dimensions = array<i32: 2>} : vector<1x1x57xi32>
    %c1_i32 = arith.constant 1 : i32
    %43 = vector.broadcast %c1_i32 : i32 to vector<1x1x57xi32>
    %44 = arith.cmpi sge, %42, %43 : vector<1x1x57xi32>
    %cst_15 = arith.constant 0xFF800000 : f32
    %45 = vector.broadcast %cst_15 : f32 to vector<1x1x57xf32>
    %46 = arith.select %44, %41, %45 : vector<1x1x57xi1>, vector<1x1x57xf32>
    %cst_16 = arith.constant dense<0xFF800000> : vector<1x1xf32>
    %47 = vector.multi_reduction <maximumf>, %46, %cst_16 [2] : vector<1x1x57xf32> to vector<1x1xf32>
    %48 = vector.shape_cast %47 : vector<1x1xf32> to vector<1x1x1xf32>
    %49 = tpu.reciprocal %48 {approx = true} : vector<1x1x1xf32> -> vector<1x1x1xf32>
    %50 = arith.mulf %48, %49 : vector<1x1x1xf32>
    %cst_17 = arith.constant 2.000000e+00 : f32
    %51 = vector.broadcast %cst_17 : f32 to vector<1x1x1xf32>
    %52 = arith.subf %51, %50 : vector<1x1x1xf32>
    %53 = arith.mulf %49, %52 : vector<1x1x1xf32>
    %54 = vector.broadcast %53 : vector<1x1x1xf32> to vector<1x1x57xf32>
    %55 = arith.mulf %41, %54 : vector<1x1x57xf32>
    %56 = arith.mulf %41, %55 : vector<1x1x57xf32>
    %cst_18 = arith.constant 1.000000e+00 : f32
    %57 = vector.broadcast %cst_18 : f32 to vector<1x1x57xf32>
    %58 = arith.mulf %56, %57 : vector<1x1x57xf32>
    %cst_19 = arith.constant 0.000000e+00 : f32
    %59 = vector.broadcast %cst_19 : f32 to vector<1x1x57xf32>
    %60 = arith.select %44, %58, %59 : vector<1x1x57xi1>, vector<1x1x57xf32>
    %cst_20 = arith.constant dense<0.000000e+00> : vector<1x1xf32>
    %61 = vector.multi_reduction <add>, %60, %cst_20 [2] : vector<1x1x57xf32> to vector<1x1xf32>
    %62 = vector.shape_cast %61 : vector<1x1xf32> to vector<1x1x1xf32>
    %cst_21 = arith.constant 5.600000e+01 : f32
    %63 = vector.broadcast %cst_21 : f32 to vector<1x1x1xf32>
    %64 = arith.divf %62, %63 : vector<1x1x1xf32>
    %65 = vector.shape_cast %64 : vector<1x1x1xf32> to vector<1x1x1xf32>
    %66 = vector.broadcast %65 : vector<1x1x1xf32> to vector<1x8x128xf32>
    %c0_22 = arith.constant 0 : index
    %c0_23 = arith.constant 0 : index
    %c0_24 = arith.constant 0 : index
    %67 = vector.load %arg2[%c0_22, %c0_23, %c0_24] : memref<1x8x128xf32, #tpu.memory_space<vmem>>, vector<1x8x128xf32>
    tpu.vector_store %arg2[%c0_22, %c0_23, %c0_24], %66 {strides = array<i32>} : memref<1x8x128xf32, #tpu.memory_space<vmem>>, vector<1x8x128xf32>,
    return
  }
}

</mosaic_0001>

<bundles_post_ra>
// kernel: tpu_custom_call.1
= control target key start
LH: loop header
LB: loop body
LE: loop exit
PB: predicated region body
PF: predicated region fallthrough
CT: control target
= control target key end

     0   :  { %v474_v2 = vmov 0   ;;  %s835_s0 = inlined_call_operand.vmem [shape: f32[1,100,57], index: 0, kind: input, shape index: {}]   ;;  %s836_s1 = inlined_call_operand.vmem [shape: s32[1,100,1], index: 1, kind: input, shape index: {}]   ;;  %s837_s2 = inlined_call_operand.hbm [shape: f32[1,8,128], index: 2, kind: output, shape index: {}]  }
   0x1   :  { %v26_v0 = vld [vmem:[%s836_s1 + $0x8] sm:$0xff]  ;;  %v25_v1 = vld [vmem:[%s836_s1] sm:$0xff]  ;;  %387 = vset.pattern.permute.xlu1 %v474_v2  ;;  %386 = vset.pattern.permute.xlu0 %v474_v2  ;;  %v27_v3 = vld [vmem:[%s836_s1 + $0x10] sm:$0xff] }
   0x2   :  { %44 = vperm.xlu1 %387, %v26_v0   ;;  %41 = vperm.xlu0 %386, %v25_v1   ;;  %v29_v4 = vld [vmem:[%s836_s1 + $0x20] sm:$0xff] }
   0x3   :  { %7 = vsyncpa [#allocation3], 0  ;;  %v30_v5 = vld [vmem:[%s836_s1 + $0x28] sm:$0xff]  ;;  %v28_v6 = vld [vmem:[%s836_s1 + $0x18] sm:$0xff]  ;;  %v38_v14 = vlaneseq  ;;  %vm131_vm0 = vcmask 465920   ;;  %vm152_vm9 = vcmask 461824  }
   0x4   :  { %v32_v7 = vld [vmem:[%s836_s1 + $0x38] sm:$0xff]  ;;  %v31_v8 = vld [vmem:[%s836_s1 + $0x30] sm:$0xff]  ;;  %v34_v9 = vld [vmem:[%s836_s1 + $0x48] sm:$0xff] }
   0x5   :  { %v33_v10 = vld [vmem:[%s836_s1 + $0x40] sm:$0xff]  ;;  %v36_v11 = vld [vmem:[%s836_s1 + $0x58] sm:$0xff]  ;;  %v35_v12 = vld [vmem:[%s836_s1 + $0x50] sm:$0xff]  ;;  %v530_v17 = vand.u32 127, %v38_v14 }
   0x6   :  { %47 = vperm.xlu1 %387, %v27_v3   ;;  %53 = vperm.xlu0 %386, %v29_v4   ;;  %v37_v13 = vld [vmem:[%s836_s1 + $0x60] sm:$0xf]  ;;  %v13_v18 = vld [vmem:[%s835_s0 + $0x8] sm:$0xff]  ;;  %v14_v20 = vld [vmem:[%s835_s0 + $0x10] sm:$0xff] }
   0x7   :  { %v12_v19 = vld [vmem:[%s835_s0] sm:$0xff]  ;;  %v17_v22 = vld [vmem:[%s835_s0 + $0x28] sm:$0xff]  ;;  %v15_v23 = vld [vmem:[%s835_s0 + $0x18] sm:$0xff]  ;;  %v106_v25 = vsub.f32 0.0, %v13_v18  ;;  %v107_v31 = vsub.f32 0.0, %v14_v20  ;;  %vm352_vm15 = vcmp.ge.s32.totalorder %v530_v17, 1 }
   0x8   :  { %v16_v21 = vld [vmem:[%s835_s0 + $0x20] sm:$0xff]  ;;  %v19_v24 = vld [vmem:[%s835_s0 + $0x38] sm:$0xff]  ;;  %v105_v26 = vsub.f32 0.0, %v12_v19  ;;  %v18_v29 = vld [vmem:[%s835_s0 + $0x30] sm:$0xff]  ;;  %v110_v33 = vsub.f32 0.0, %v17_v22  ;;  %v108_v35 = vsub.f32 0.0, %v15_v23 }
   0x9   :  { %v560_v30 = vld [vmem:[%s835_s0 + $0x48] sm:$0xff]  ;;  %v109_v32 = vsub.f32 0.0, %v16_v21  ;;  %v20_v34 = vld [vmem:[%s835_s0 + $0x40] sm:$0xff]  ;;  %v112_v36 = vsub.f32 0.0, %v19_v24  ;;  %v571_v37 = vld [vmem:[%s835_s0 + $0x58] sm:$0xff]  ;;  %v111_v39 = vsub.f32 0.0, %v18_v29 }
   0xa   :  { %56 = vperm.xlu1 %387, %v30_v5   ;;  %50 = vperm.xlu0 %386, %v28_v6   ;;  %v114_v40 = vsub.f32 0.0, %v560_v30  ;;  %v581_v41 = vld [vmem:[%s835_s0 + $0x50] sm:$0xff]  ;;  %v586_v42 = vld [vmem:[%s835_s0 + $0x60] sm:$0xf]  ;;  %v113_v48 = vsub.f32 0.0, %v20_v34  ;;  %v116_v52 = vsub.f32 0.0, %v571_v37 }
   0xb   :  { %v115_v54 = vsub.f32 0.0, %v581_v41  ;;  %v117_v55 = vsub.f32 0.0, %v586_v42  ;;  %s475_s0 = smov [#allocation2]  }
   0xc   :  { %s376_s4 = sshll.u32 %s475_s0, 4  ;;  %s377_s4 = int_to_ptr.vmem [resolvable:$true] %s376_s4 }
   0xd   :  { %s450_s5 = scalar_lea.vmem %s377_s4, 128  ;;  %p455_p1 = scmp.lt.s32.totalorder %s377_s4, %s377_s4 }
   0xe   :  { %62 = vperm.xlu1 %387, %v32_v7   ;;  %59 = vperm.xlu0 %386, %v31_v8   ;;  %p451_p0 = scmp.ne.s32.totalorder %s377_s4, %s450_s5  ;;  %p456_p2 = scmp.lt.s32.totalorder %s450_s5, %s450_s5 }
  0x10   :  { %p457_p3 = por %p456_p2, %p455_p1 }
  0x12   :  { %68 = vperm.xlu1 %387, %v34_v9   ;;  %65 = vperm.xlu0 %386, %v33_v10   ;;  %p458_p4 = pnand %p457_p3, %p451_p0 }
  0x16   :  { %74 = vperm.xlu1 %387, %v36_v11   ;;  %71 = vperm.xlu0 %386, %v35_v12  }
  0x1a   :  { %77 = vperm.xlu0 %386, %v37_v13  }
  0x81   :  { %v45_v15 = vpop.permute.xlu1 %44  ;;  %v42_v16 = vpop.permute.xlu0 %41 }
  0x82   :  { %vm80_vm1 = vcmp.eq.s32.totalorder %v530_v17, %v45_v15  ;;  %vm79_vm2 = vcmp.eq.s32.totalorder %v530_v17, %v42_v16 }
  0x83   :  { %v575_v38 = vsel %vm80_vm1, -30000.0, %v13_v18  ;;  %v590_v43 = vsel %vm80_vm1, %v106_v25, -30000.0  ;;  %v594_v44 = vsel %vm79_vm2, -30000.0, %v12_v19  ;;  %v598_v45 = vsel %vm79_vm2, %v105_v26, -30000.0 }
  0x84   :  { %v615_v53 = vsel %vm131_vm0, %v575_v38, -inf  ;;  %v622_v56 = vsel %vm131_vm0, %v590_v43, -inf  ;;  %v132_v57 = vsel %vm131_vm0, %v594_v44, -inf  ;;  %v628_v58 = vsel %vm131_vm0, %v598_v45, -inf }
  0x85   :  { %v48_v27 = vpop.permute.xlu1 %47  ;;  %v54_v28 = vpop.permute.xlu0 %53 }
  0x86   :  { %vm81_vm3 = vcmp.eq.s32.totalorder %v530_v17, %v48_v27  ;;  %vm83_vm4 = vcmp.eq.s32.totalorder %v530_v17, %v54_v28 }
  0x87   :  { %v602_v49 = vsel %vm81_vm3, -30000.0, %v14_v20  ;;  %v606_v50 = vsel %vm83_vm4, -30000.0, %v16_v21  ;;  %v610_v51 = vsel %vm83_vm4, %v109_v32, -30000.0  ;;  %v632_v59 = vsel %vm81_vm3, %v107_v31, -30000.0 }
  0x88   :  { %v636_v60 = vsel %vm131_vm0, %v602_v49, -inf  ;;  %v136_v61 = vsel %vm131_vm0, %v606_v50, -inf  ;;  %v246_v62 = vsel %vm131_vm0, %v610_v51, -inf  ;;  %v244_v3 = vsel %vm131_vm0, %v632_v59, -inf }
  0x89   :  { %v57_v46 = vpop.permute.xlu1 %56  ;;  %v51_v47 = vpop.permute.xlu0 %50  ;;  %v137_v7 = vmax.f32 %v132_v57, %v136_v61  ;;  %v247_v8 = vmax.f32 %v628_v58, %v246_v62 }
  0x8a   :  { %vm84_vm5 = vcmp.eq.s32.totalorder %v530_v17, %v57_v46  ;;  %vm82_vm6 = vcmp.eq.s32.totalorder %v530_v17, %v51_v47 }
  0x8b   :  { %v643_v1 = vsel %vm84_vm5, -30000.0, %v17_v22  ;;  %v645_v2 = vsel %vm84_vm5, %v110_v33, -30000.0  ;;  %v658_v9 = vsel %vm82_vm6, -30000.0, %v15_v23  ;;  %v660_v10 = vsel %vm82_vm6, %v108_v35, -30000.0 }
  0x8c   :  { %v138_v11 = vsel %vm131_vm0, %v643_v1, -inf  ;;  %v248_v12 = vsel %vm131_vm0, %v645_v2, -inf  ;;  %v135_v20 = vsel %vm131_vm0, %v658_v9, -inf  ;;  %v245_v21 = vsel %vm131_vm0, %v660_v10, -inf }
  0x8d   :  { %v63_v63 = vpop.permute.xlu1 %62  ;;  %v60_v0 = vpop.permute.xlu0 %59  ;;  %v249_v25 = vmax.f32 %v622_v56, %v248_v12 }
  0x8e   :  { %vm86_vm7 = vcmp.eq.s32.totalorder %v530_v17, %v63_v63  ;;  %vm85_vm8 = vcmp.eq.s32.totalorder %v530_v17, %v60_v0 }
  0x8f   :  { %v651_v4 = vsel %vm86_vm7, -30000.0, %v19_v24  ;;  %v653_v5 = vsel %vm86_vm7, %v112_v36, -30000.0  ;;  %v655_v6 = vsel %vm85_vm8, -30000.0, %v18_v29  ;;  %v668_v14 = vsel %vm85_vm8, %v111_v39, -30000.0 }
  0x90   :  { %v142_v13 = vsel %vm131_vm0, %v651_v4, -inf  ;;  %v252_v18 = vsel %vm131_vm0, %v653_v5, -inf  ;;  %v140_v19 = vsel %vm131_vm0, %v655_v6, -inf  ;;  %v139_v24 = vmax.f32 %v615_v53, %v138_v11 }
  0x91   :  { %v69_v15 = vpop.permute.xlu1 %68  ;;  %v66_v16 = vpop.permute.xlu0 %65  ;;  %v143_v26 = vmax.f32 %v135_v20, %v142_v13  ;;  %v250_v27 = vsel %vm131_vm0, %v668_v14, -inf  ;;  %v253_v28 = vmax.f32 %v245_v21, %v252_v18  ;;  %v141_v29 = vmax.f32 %v636_v60, %v140_v19 }
  0x92   :  { %vm88_vm10 = vcmp.eq.s32.totalorder %v530_v17, %v69_v15  ;;  %vm87_vm11 = vcmp.eq.s32.totalorder %v530_v17, %v66_v16  ;;  %v251_v56 = vmax.f32 %v244_v3, %v250_v27 }
  0x93   :  { %v680_v22 = vsel %vm87_vm11, -30000.0, %v20_v34  ;;  %v682_v23 = vsel %vm87_vm11, %v113_v48, -30000.0  ;;  %v690_v31 = vsel %vm88_vm10, -30000.0, %v560_v30  ;;  %v692_v32 = vsel %vm88_vm10, %v114_v40, -30000.0 }
  0x94   :  { %v144_v35 = vsel %vm131_vm0, %v680_v22, -inf  ;;  %v254_v36 = vsel %vm131_vm0, %v682_v23, -inf }
  0x95   :  { %v75_v33 = vpop.permute.xlu1 %74  ;;  %v72_v34 = vpop.permute.xlu0 %71  ;;  %v255_v58 = vmax.f32 %v247_v8, %v254_v36 }
  0x96   :  { %vm90_vm12 = vcmp.eq.s32.totalorder %v530_v17, %v75_v33  ;;  %vm89_vm13 = vcmp.eq.s32.totalorder %v530_v17, %v72_v34 }
  0x97   :  { %v701_v39 = vsel %vm90_vm12, -30000.0, %v571_v37  ;;  %v703_v46 = vsel %vm90_vm12, %v116_v52, -30000.0  ;;  %v706_v30 = vsel %vm89_vm13, -30000.0, %v581_v41  ;;  %v708_v40 = vsel %vm89_vm13, %v115_v54, -30000.0 }
  0x98   :  { %v150_v47 = vsel %vm131_vm0, %v701_v39, -inf  ;;  %v260_v48 = vsel %vm131_vm0, %v703_v46, -inf  ;;  %v148_v53 = vsel %vm131_vm0, %v706_v30, -inf  ;;  %v258_v37 = vsel %vm131_vm0, %v708_v40, -inf }
  0x99   :  { %v146_v52 = vsel %vm131_vm0, %v690_v31, -inf  ;;  %v256_v41 = vsel %vm131_vm0, %v692_v32, -inf  ;;  %v145_v54 = vmax.f32 %v137_v7, %v144_v35  ;;  %v78_v57 = vpop.permute.xlu0 %77  ;;  %v151_v60 = vmax.f32 %v143_v26, %v150_v47 }
  0x9a   :  { %v261_v61 = vmax.f32 %v253_v28, %v260_v48  ;;  %vm91_vm14 = vcmp.eq.s32.totalorder %v530_v17, %v78_v57  ;;  %v149_v62 = vmax.f32 %v141_v29, %v148_v53  ;;  %v259_v63 = vmax.f32 %v251_v56, %v258_v37 }
  0x9b   :  { %v724_v0 = vsel %vm91_vm14, -30000.0, %v586_v42  ;;  %v728_v3 = vsel %vm91_vm14, %v117_v55, -30000.0  ;;  %v147_v8 = vmax.f32 %v139_v24, %v146_v52  ;;  %v257_v12 = vmax.f32 %v249_v25, %v256_v41 }
  0x9c   :  { %v153_v11 = vsel %vm152_vm9, %v724_v0, -inf  ;;  %v262_v7 = vsel %vm152_vm9, %v728_v3, -inf  ;;  %v156_v16 = vmax.f32 %v149_v62, %v151_v60  ;;  %v265_v18 = vmax.f32 %v259_v63, %v261_v61 }
  0x9d   :  { %v154_v13 = vmax.f32 %v145_v54, %v153_v11  ;;  %v263_v15 = vmax.f32 %v255_v58, %v262_v7 }
  0x9f   :  { %v155_v19 = vmax.f32 %v154_v13, %v147_v8  ;;  %v264_v20 = vmax.f32 %v263_v15, %v257_v12 }
  0xa1   :  { %v157_v21 = vmax.f32 %v155_v19, %v156_v16  ;;  %v266_v26 = vmax.f32 %v264_v20, %v265_v18 }
  0xa3   :  { %v158_v27 = vrot.slane %v157_v21, 4  ;;  %v267_v42 = vrot.slane %v266_v26, 4 }
  0xa5   :  { %v159_v55 = vmax.f32 %v157_v21, %v158_v27  ;;  %v268_v28 = vmax.f32 %v266_v26, %v267_v42 }
  0xa7   :  { %v160_v29 = vrot.slane %v159_v55, 2  ;;  %v269_v33 = vrot.slane %v268_v28, 2 }
  0xa9   :  { %v161_v34 = vmax.f32 %v159_v55, %v160_v29  ;;  %v270_v36 = vmax.f32 %v268_v28, %v269_v33 }
  0xab   :  { %v162_v35 = vrot.slane %v161_v34, 1  ;;  %v271_v25 = vrot.slane %v270_v36, 1 }
  0xad   :  { %v163_v47 = vmax.f32 %v161_v34, %v162_v35  ;;  %v272_v41 = vmax.f32 %v270_v36, %v271_v25 }
  0xaf   :  { %v734_v24 = vmax.f32 %v163_v47, 0.0  ;;  %v750_v61 = vmax.f32 %v272_v41, 0.0 }
  0xb1   :  { %v165_v48 = vsub.f32 %v594_v44, %v734_v24  ;;  %v166_v53 = vsub.f32 %v575_v38, %v734_v24  ;;  %v167_v37 = vsub.f32 %v602_v49, %v734_v24  ;;  %v168_v56 = vsub.f32 %v658_v9, %v734_v24 }
  0xb2   :  { %v169_v52 = vsub.f32 %v606_v50, %v734_v24  ;;  %v170_v60 = vsub.f32 %v643_v1, %v734_v24  ;;  %v171_v38 = vsub.f32 %v655_v6, %v734_v24  ;;  %v172_v9 = vsub.f32 %v651_v4, %v734_v24 }
  0xb3   :  { %v178_v54 = vmul.f32 1.442695, %v165_v48  ;;  %v180_v57 = vmul.f32 1.442695, %v166_v53  ;;  %v182_v58 = vmul.f32 1.442695, %v167_v37  ;;  %v173_v50 = vsub.f32 %v680_v22, %v734_v24 }
  0xb4   :  { %v184_v44 = vmul.f32 1.442695, %v168_v56  ;;  %v186_v49 = vmul.f32 1.442695, %v169_v52  ;;  %v188_v62 = vmul.f32 1.442695, %v170_v60  ;;  %v174_v1 = vsub.f32 %v690_v31, %v734_v24 }
  0xb5   :  { %388 = vpow2.f32 %v178_v54  ;;  %v190_v63 = vmul.f32 1.442695, %v171_v38  ;;  %v274_v6 = vsub.f32 %v598_v45, %v750_v61  ;;  %v192_v11 = vmul.f32 1.442695, %v172_v9 }
  0xb6   :  { %390 = vpow2.f32 %v180_v57  ;;  %v275_v7 = vsub.f32 %v590_v43, %v750_v61  ;;  %v194_v4 = vmul.f32 1.442695, %v173_v50  ;;  %v276_v8 = vsub.f32 %v632_v59, %v750_v61 }
  0xb7   :  { %392 = vpow2.f32 %v182_v58  ;;  %v196_v22 = vmul.f32 1.442695, %v174_v1  ;;  %v277_v12 = vsub.f32 %v660_v10, %v750_v61  ;;  %v175_v31 = vsub.f32 %v706_v30, %v734_v24 }
  0xb8   :  { %394 = vpow2.f32 %v184_v44  ;;  %v287_v13 = vmul.f32 1.442695, %v274_v6  ;;  %v278_v45 = vsub.f32 %v610_v51, %v750_v61  ;;  %v289_v43 = vmul.f32 1.442695, %v275_v7 }
  0xb9   :  { %396 = vpow2.f32 %v186_v49  ;;  %v176_v18 = vsub.f32 %v701_v39, %v734_v24  ;;  %v291_v19 = vmul.f32 1.442695, %v276_v8  ;;  %v279_v20 = vsub.f32 %v645_v2, %v750_v61 }
  0xba   :  { %398 = vpow2.f32 %v188_v62  ;;  %v293_v21 = vmul.f32 1.442695, %v277_v12  ;;  %v177_v51 = vsub.f32 %v724_v0, %v734_v24  ;;  %v198_v27 = vmul.f32 1.442695, %v175_v31 }
  0xbb   :  { %400 = vpow2.f32 %v190_v63  ;;  %v280_v55 = vsub.f32 %v668_v14, %v750_v61  ;;  %v295_v28 = vmul.f32 1.442695, %v278_v45  ;;  %v200_v33 = vmul.f32 1.442695, %v176_v18 }
  0xbc   :  { %402 = vpow2.f32 %v192_v11  ;;  %v281_v35 = vsub.f32 %v653_v5, %v750_v61  ;;  %v297_v0 = vmul.f32 1.442695, %v279_v20  ;;  %v202_v47 = vmul.f32 1.442695, %v177_v51 }
  0xbd   :  { %404 = vpow2.f32 %v194_v4  ;;  %v282_v14 = vsub.f32 %v682_v23, %v750_v61  ;;  %v299_v53 = vmul.f32 1.442695, %v280_v55  ;;  %v283_v5 = vsub.f32 %v692_v32, %v750_v61 }
  0xbe   :  { %406 = vpow2.f32 %v196_v22  ;;  %v301_v54 = vmul.f32 1.442695, %v281_v35  ;;  %v284_v23 = vsub.f32 %v708_v40, %v750_v61  ;;  %v285_v50 = vsub.f32 %v703_v46, %v750_v61 }
  0xbf   :  { %v389_v15 = vpop.eup %388  ;;  %408 = vpow2.f32 %v287_v13  ;;  %v303_v38 = vmul.f32 1.442695, %v282_v14  ;;  %v305_v1 = vmul.f32 1.442695, %v283_v5  ;;  %v286_v7 = vsub.f32 %v728_v3, %v750_v61 }
  0xc0   :  { %v391_v16 = vpop.eup %390  ;;  %v204_v59 = vsel %vm131_vm0, %v389_v15, 0.0  ;;  %410 = vpow2.f32 %v289_v43  ;;  %v307_v22 = vmul.f32 1.442695, %v284_v23  ;;  %v309_v43 = vmul.f32 1.442695, %v285_v50 }
  0xc1   :  { %v393_v10 = vpop.eup %392  ;;  %v205_v30 = vsel %vm131_vm0, %v391_v16, 0.0  ;;  %412 = vpow2.f32 %v291_v19 }
  0xc2   :  { %v395_v26 = vpop.eup %394  ;;  %v206_v42 = vadd.f32 %v205_v30, %v204_v59  ;;  %v207_v39 = vsel %vm131_vm0, %v393_v10, 0.0  ;;  %414 = vpow2.f32 %v293_v21  ;;  %v311_v30 = vmul.f32 1.442695, %v286_v7 }
  0xc3   :  { %v397_v29 = vpop.eup %396  ;;  %v209_v2 = vsel %vm131_vm0, %v395_v26, 0.0  ;;  %416 = vpow2.f32 %v198_v27 }
  0xc4   :  { %v208_v34 = vadd.f32 %v207_v39, %v206_v42  ;;  %v399_v36 = vpop.eup %398  ;;  %v211_v48 = vsel %vm131_vm0, %v397_v29, 0.0  ;;  %418 = vpow2.f32 %v295_v28 }
  0xc5   :  { %v401_v37 = vpop.eup %400  ;;  %420 = vpow2.f32 %v200_v33  ;;  %v213_v41 = vsel %vm131_vm0, %v399_v36, 0.0 }
  0xc6   :  { %v210_v25 = vadd.f32 %v209_v2, %v208_v34  ;;  %v403_v52 = vpop.eup %402  ;;  %422 = vpow2.f32 %v297_v0  ;;  %v215_v44 = vsel %vm131_vm0, %v401_v37, 0.0  ;;  %v235_v0 = vsub.f32 0.0, %v734_v24 }
  0xc7   :  { %v405_v57 = vpop.eup %404  ;;  %424 = vpow2.f32 %v202_v47  ;;  %v217_v32 = vsel %vm131_vm0, %v403_v52, 0.0 }
  0xc8   :  { %v212_v56 = vadd.f32 %v211_v48, %v210_v25  ;;  %v407_v60 = vpop.eup %406  ;;  %426 = vpow2.f32 %v299_v53  ;;  %v219_v8 = vsel %vm131_vm0, %v405_v57, 0.0  ;;  %v236_v52 = vmul.f32 1.442695, %v235_v0 }
  0xc9   :  { %v409_v49 = vpop.eup %408  ;;  %428 = vpow2.f32 %v301_v54  ;;  %v221_v45 = vsel %vm131_vm0, %v407_v60, 0.0 }
  0xca   :  { %v214_v58 = vadd.f32 %v213_v41, %v212_v56  ;;  %v411_v62 = vpop.eup %410  ;;  %v313_v63 = vsel %vm131_vm0, %v409_v49, 0.0  ;;  %430 = vpow2.f32 %v303_v38  ;;  %v344_v38 = vsub.f32 0.0, %v750_v61 }
  0xcb   :  { %v413_v6 = vpop.eup %412  ;;  %v314_v40 = vsel %vm131_vm0, %v411_v62, 0.0  ;;  %432 = vpow2.f32 %v305_v1 }
  0xcc   :  { %v216_v9 = vadd.f32 %v215_v44, %v214_v58  ;;  %v415_v4 = vpop.eup %414  ;;  %v315_v46 = vadd.f32 %v314_v40, %v313_v63  ;;  %v316_v13 = vsel %vm131_vm0, %v413_v6, 0.0  ;;  %434 = vpow2.f32 %v307_v22 }
  0xcd   :  { %v417_v12 = vpop.eup %416  ;;  %v318_v59 = vsel %vm131_vm0, %v415_v4, 0.0  ;;  %436 = vpow2.f32 %v309_v43  ;;  %v345_v63 = vmul.f32 1.442695, %v344_v38 }
  0xce   :  { %v218_v11 = vadd.f32 %v217_v32, %v216_v9  ;;  %v419_v15 = vpop.eup %418  ;;  %v317_v16 = vadd.f32 %v316_v13, %v315_v46  ;;  %v223_v10 = vsel %vm131_vm0, %v417_v12, 0.0  ;;  %438 = vpow2.f32 %v311_v30 }
  0xcf   :  { %v421_v18 = vpop.eup %420  ;;  %v320_v51 = vsel %vm131_vm0, %v419_v15, 0.0  ;;  %440 = vpow2.f32 %v236_v52 }
  0xd0   :  { %v220_v31 = vadd.f32 %v219_v8, %v218_v11  ;;  %v423_v19 = vpop.eup %422  ;;  %v319_v20 = vadd.f32 %v318_v59, %v317_v16  ;;  %v225_v42 = vsel %vm131_vm0, %v421_v18, 0.0  ;;  %442 = vpow2.f32 %v345_v63 }
  0xd1   :  { %v425_v21 = vpop.eup %424  ;;  %v322_v28 = vsel %vm131_vm0, %v423_v19, 0.0 }
  0xd2   :  { %v222_v3 = vadd.f32 %v221_v45, %v220_v31  ;;  %v427_v27 = vpop.eup %426  ;;  %v321_v39 = vadd.f32 %v320_v51, %v319_v20  ;;  %v227_v33 = vsel %vm152_vm9, %v425_v21, 0.0 }
  0xd3   :  { %v429_v29 = vpop.eup %428  ;;  %v324_v35 = vsel %vm131_vm0, %v427_v27, 0.0 }
  0xd4   :  { %v224_v26 = vadd.f32 %v223_v10, %v222_v3  ;;  %v323_v34 = vadd.f32 %v322_v28, %v321_v39  ;;  %v431_v36 = vpop.eup %430  ;;  %v326_v48 = vsel %vm131_vm0, %v429_v29, 0.0 }
  0xd5   :  { %v433_v14 = vpop.eup %432  ;;  %v328_v56 = vsel %vm131_vm0, %v431_v36, 0.0 }
  0xd6   :  { %v226_v55 = vadd.f32 %v225_v42, %v224_v26  ;;  %v325_v47 = vadd.f32 %v324_v35, %v323_v34  ;;  %v435_v41 = vpop.eup %434  ;;  %v330_v57 = vsel %vm131_vm0, %v433_v14, 0.0 }
  0xd7   :  { %v437_v58 = vpop.eup %436  ;;  %v332_v23 = vsel %vm131_vm0, %v435_v41, 0.0 }
  0xd8   :  { %v228_v2 = vadd.f32 %v227_v33, %v226_v55  ;;  %v327_v53 = vadd.f32 %v326_v48, %v325_v47  ;;  %v439_v49 = vpop.eup %438  ;;  %v334_v50 = vsel %vm131_vm0, %v437_v58, 0.0 }
  0xd9   :  { %v336_v1 = vsel %vm152_vm9, %v439_v49, 0.0  ;;  %v441_v4 = vpop.eup %440 }
  0xda   :  { %v229_v25 = vrot.slane %v228_v2, 4  ;;  %v329_v5 = vadd.f32 %v328_v56, %v327_v53  ;;  %v443_v13 = vpop.eup %442 }
  0xdc   :  { %v230_v37 = vadd.f32 %v229_v25, %v228_v2  ;;  %v331_v60 = vadd.f32 %v330_v57, %v329_v5 }
  0xde   :  { %v231_v54 = vrot.slane %v230_v37, 2  ;;  %v333_v9 = vadd.f32 %v332_v23, %v331_v60 }
  0xe0   :  { %v232_v44 = vadd.f32 %v231_v54, %v230_v37  ;;  %v335_v62 = vadd.f32 %v334_v50, %v333_v9 }
  0xe2   :  { %v233_v32 = vrot.slane %v232_v44, 1  ;;  %v337_v6 = vadd.f32 %v336_v1, %v335_v62 }
  0xe4   :  { %v338_v11 = vrot.slane %v337_v6, 4  ;;  %v234_v7 = vadd.f32 %v233_v32, %v232_v44 }
  0xe6   :  { %v339_v40 = vadd.f32 %v338_v11, %v337_v6  ;;  %v238_v22 = vadd.f32 %v441_v4, %v234_v7 }
  0xe8   :  { %v340_v8 = vrot.slane %v339_v40, 2  ;;  %444 = vlog2.f32 %v238_v22 }
  0xea   :  { %v341_v46 = vadd.f32 %v340_v8, %v339_v40 }
  0xec   :  { %v342_v12 = vrot.slane %v341_v46, 1 }
  0xee   :  { %v343_v31 = vadd.f32 %v342_v12, %v341_v46 }
  0xf0   :  { %v347_v15 = vadd.f32 %v443_v13, %v343_v31 }
  0xf2   :  { %446 = vlog2.f32 %v347_v15  ;;  %v445_v45 = vpop.eup %444 }
  0xf3   :  { %v240_v43 = vmul.f32 0.6931472, %v445_v45 }
  0xf5   :  { %v241_v18 = vadd.f32 %v240_v43, %v734_v24 }
  0xfc   :  { %v447_v16 = vpop.eup %446 }
  0xfd   :  { %v349_v3 = vmul.f32 0.6931472, %v447_v16 }
  0xff   :  { %v350_v59 = vadd.f32 %v349_v3, %v750_v61 }
 0x101   :  { %v351_v19 = vadd.f32 %v350_v59, %v241_v18 }
 0x103   :  { %v353_v10 = vsel %vm352_vm15, %v351_v19, -inf }
 0x104   :  { %v354_v30 = vsel %vm131_vm0, %v353_v10, -inf }
 0x105   :  { %355 = vmax.xlane.f32.xlu1 %v354_v30 }
 0x192   :  { %v356_v20 = vpop.xlane.xlu1 %355 }
 0x193   :  { %448 = vrcp.f32 %v356_v20 }
 0x19d   :  { %v449_v21 = vpop.eup %448 }
 0x19e   :  { %v358_v26 = vmul.f32 %v449_v21, %v356_v20 }
 0x1a0   :  { %v359_v51 = vsub.f32 2.0, %v358_v26 }
 0x1a2   :  { %v360_v27 = vmul.f32 %v449_v21, %v359_v51 }
 0x1a4   :  { %v361_v42 = vmul.f32 %v360_v27, %v351_v19 }
 0x1a6   :  { %v362_v39 = vmul.f32 %v361_v42, %v351_v19 }
 0x1a8   :  { %v363_v55 = vsel %vm352_vm15, %v362_v39, 0.0 }
 0x1a9   :  { %v364_v24 = vsel %vm131_vm0, %v363_v55, 0.0 }
 0x1aa   :  { %365 = vadd.xlane.f32.xlu0 %v364_v24 }
 0x237   :  { %v366_v17 = vpop.xlane.xlu0 %365 }
 0x238   :  { %v368_v61 = vmul.f32 0.017857144, %v366_v17 }
 0x23a   :  { %369 = vst [vmem:[#allocation2] sm:$0xff] %v368_v61 }
 0x23b   :  { %461 = shalt.err (!%p458_p4)
}
 0x23c   :  { %s462_s8 = scalar_lea.hbm %s837_s2, 128 }
 0x23d   :  { %p463_p5 = scmp.ne.s32.totalorder %s837_s2, %s462_s8  ;;  %p466_p6 = scmp.lt.u32.totalorder %s462_s8, %s837_s2 }
 0x23f   :  { %p468_p7 = pnand %p466_p6, %p463_p5 }
 0x241   :  { %471 = shalt.err (!%p468_p7)
}
 0x242   :  { %379 = dma.vmem_to_hbm [thread:$0]  %s377_s4, 128, %s837_s2, [#allocation3]  }
 0x243   :  { %472 = dma.done.wait [#allocation3], 128  }
 0x244   :  { %473 = vsyncadd [#allocation3], 4294967168 }
 0x245   :  { %383 = vsyncpa [#allocation3], 1 }

</bundles_post_ra>
